<compile_context>
chip_gen: v6e
topology: v6e:2x2x1
jax: 0.10.0
libtpu: 0.0.40
codegen_flags: <defaults>
</compile_context>

<pallas_src>
import functools

import jax
import jax.numpy as jnp
from jax.experimental import pallas as pl
from jax.experimental.pallas import tpu as pltpu


def _patch_copy_kernel(x_ref, o_ref, *, s_begin, stride, patch_len, seq_len,
                       patches_per_step, single_chunk):
    """Pure sublane-window copies (no cross-lane movement).

    x_ref: (b_tile, seq_len, n_vars)                       time->sublanes, vars->lanes
    o_ref: (b_tile, patches_per_step, patch_len, n_vars)
    """
    if single_chunk:
        base = s_begin                                        # static python int
    else:
        base = pl.program_id(1) * (patches_per_step * stride) + s_begin

    max_src = seq_len - patch_len
    for pp in range(patches_per_step):                        # bounded static unroll
        src = base + pp * stride
        if not single_chunk:
            # Clamp so the ragged last patch-chunk never reads past the input
            # block; the corresponding output rows are clipped by Pallas anyway.
            src = jnp.minimum(src, max_src)
        o_ref[:, pp, :, :] = x_ref[:, pl.ds(src, patch_len), :]


def _vmem_budget_bytes():
    """~70% of physical VMEM (>=45 MiB on v7x, ~90 MiB on v5e/v6e), clamped."""
    cap = None
    try:
        cap = getattr(pltpu.get_tpu_info(), "vmem_capacity_bytes", None)
    except Exception:
        cap = None
    if not cap:
        cap = 64 * 1024 * 1024                                # conservative fallback
    budget = int(cap) * 7 // 10
    return max(32 * 1024 * 1024, min(budget, 96 * 1024 * 1024))


def _choose_tiles(bs, seq_len, n_vars, num_patch, patch_len, itemsize, budget):
    """Pick (b_tile, patches_per_step) so double-buffered in+out blocks fit budget."""
    patches_per_step = min(num_patch, 16)                     # cap static unroll / block rows
    # Shrink the patch chunk first if a single batch row does not fit.
    while patches_per_step > 1 and (
        2 * itemsize * n_vars * (seq_len + patches_per_step * patch_len) > budget
    ):
        patches_per_step = max(1, patches_per_step // 2)
    per_batch = 2 * itemsize * n_vars * (seq_len + patches_per_step * patch_len)
    # TODO(synk): for extreme shapes where even one batch row exceeds the VMEM
    # budget, additionally tile the seq/lane axes; not needed for PatchTST configs.
    b_tile = int(max(1, min(bs, budget // max(per_batch, 1))))

    num_chunks = pl.cdiv(num_patch, patches_per_step)
    if num_chunks == 1 and bs >= 2:
        # Guarantee >= 2 grid steps so the DMA pipeline overlaps and the
        # "parallel" axis can shard across v7x's two TensorCores.
        b_tile = min(b_tile, -(-bs // 2))
    return b_tile, patches_per_step, int(num_chunks)


def patch_forward(x, *, seq_len, patch_len, stride):
    """JAX/Pallas equivalent of Patch.forward: returns [bs, num_patch, n_vars, patch_len]."""
    bs, xl, n_vars = x.shape
    assert xl == seq_len, "input length must equal configured seq_len"

    num_patch = (max(seq_len, patch_len) - patch_len) // stride + 1
    tgt_len = patch_len + stride * (num_patch - 1)
    s_begin = seq_len - tgt_len
    itemsize = jnp.dtype(x.dtype).itemsize

    if stride == patch_len:
        # Non-overlapping fast path: pure slice + reshape, no kernel needed
        # (XLA fuses slice/reshape/transpose into one copy pass).
        y = x[:, s_begin:, :].reshape(bs, num_patch, patch_len, n_vars)
        return jnp.swapaxes(y, 2, 3)

    budget = _vmem_budget_bytes()
    b_tile, patches_per_step, num_chunks = _choose_tiles(
        bs, seq_len, n_vars, num_patch, patch_len, itemsize, budget)
    grid = (pl.cdiv(bs, b_tile), num_chunks)

    kernel = functools.partial(
        _patch_copy_kernel,
        s_begin=s_begin, stride=stride, patch_len=patch_len, seq_len=seq_len,
        patches_per_step=patches_per_step, single_chunk=(num_chunks == 1),
    )

    cost = pl.CostEstimate(
        flops=0,
        transcendentals=0,
        bytes_accessed=(bs * seq_len * n_vars
                        + bs * num_patch * patch_len * n_vars) * itemsize,
    )

    y = pl.pallas_call(
        kernel,
        out_shape=jax.ShapeDtypeStruct((bs, num_patch, patch_len, n_vars), x.dtype),
        grid=grid,
        in_specs=[
            # Full seq per batch tile; block index ignores the chunk axis, so the
            # input is DMA'd once per batch tile and reused across patch chunks.
            pl.BlockSpec((b_tile, seq_len, n_vars), lambda b, c: (b, 0, 0)),
        ],
        out_specs=pl.BlockSpec(
            (b_tile, patches_per_step, patch_len, n_vars),
            lambda b, c: (b, c, 0, 0),
        ),
        compiler_params=pltpu.CompilerParams(
            dimension_semantics=("parallel", "parallel"),
            vmem_limit_bytes=budget,            # same number used for tile sizing
        ),
        cost_estimate=cost,
    )(x)

    # [bs, num_patch, patch_len, n_vars] -> PyTorch layout [bs, num_patch, n_vars, patch_len]
    return jnp.swapaxes(y, 2, 3)


def _patch_reference(x, seq_len, patch_len, stride):
    """Pure-JAX reference of the PyTorch unfold semantics."""
    num_patch = (max(seq_len, patch_len) - patch_len) // stride + 1
    tgt_len = patch_len + stride * (num_patch - 1)
    s_begin = seq_len - tgt_len
    xs = x[:, s_begin:, :]
    return jnp.stack(
        [
            jnp.transpose(xs[:, i * stride: i * stride + patch_len, :], (0, 2, 1))
            for i in range(num_patch)
        ],
        axis=1,
    )


if __name__ == "__main__":
    key = jax.random.PRNGKey(0)

    configs = [
        # overlapping windows, non-trivial s_begin=2, single patch chunk, batch-tiled grid
        dict(bs=2, n_vars=4, seq_len=18, patch_len=4, stride=3),
        # overlapping windows, 31 patches -> 2 patch chunks (exercises dynamic offsets + clamp)
        dict(bs=3, n_vars=5, seq_len=128, patch_len=8, stride=4),
        # non-overlapping (stride == patch_len) -> kernel-free fast path
        dict(bs=2, n_vars=7, seq_len=24, patch_len=8, stride=8),
    ]

    for i, cfg in enumerate(configs):
        key, sub = jax.random.split(key)
        x = jax.random.normal(
            sub, (cfg["bs"], cfg["seq_len"], cfg["n_vars"]), dtype=jnp.float32
        )
        out = patch_forward(
            x, seq_len=cfg["seq_len"], patch_len=cfg["patch_len"], stride=cfg["stride"]
        )
        out = jax.block_until_ready(out)

        ref = _patch_reference(x, cfg["seq_len"], cfg["patch_len"], cfg["stride"])
        num_patch = (max(cfg["seq_len"], cfg["patch_len"]) - cfg["patch_len"]) // cfg["stride"] + 1

        assert out.shape == (cfg["bs"], num_patch, cfg["n_vars"], cfg["patch_len"]), out.shape
        assert out.dtype == x.dtype
        assert jnp.array_equal(out, ref), f"mismatch vs reference unfold (config {i})"

    print("KERNEL_OK")
</pallas_src>

<mosaic_0001>
module attributes {stable_mosaic.version = 11 : i64} {
  func.func @_patch_copy_kernel(%arg0: i32, %arg1: i32, %arg2: memref<1x18x4xf32, #tpu.memory_space<vmem>>, %arg3: memref<1x5x4x4xf32, #tpu.memory_space<vmem>>) attributes {dimension_semantics = [#tpu.dimension_semantics<parallel>, #tpu.dimension_semantics<parallel>], iteration_bounds = array<i64: 2, 1>, scalar_prefetch = 0 : i64, scratch_operands = 0 : i64, tpu.core_type = #tpu.core_type<tc>, window_params = [{transform_indices = @transform_0, window_bounds = array<i64: 1, 18, 4>}, {transform_indices = @transform_1, window_bounds = array<i64: 1, 5, 4, 4>}]} {
    %c0 = arith.constant 0 : index
    %c2 = arith.constant 2 : index
    %c0_0 = arith.constant 0 : index
    %0 = vector.load %arg2[%c0, %c2, %c0_0] : memref<1x18x4xf32, #tpu.memory_space<vmem>>, vector<1x4x4xf32>
    %c0_1 = arith.constant 0 : index
    %c0_2 = arith.constant 0 : index
    %c0_3 = arith.constant 0 : index
    %c0_4 = arith.constant 0 : index
    %1 = vector.load %arg3[%c0_1, %c0_2, %c0_3, %c0_4] : memref<1x5x4x4xf32, #tpu.memory_space<vmem>>, vector<1x1x4x4xf32>
    %2 = vector.shape_cast %1 : vector<1x1x4x4xf32> to vector<1x4x4xf32>
    %3 = vector.shape_cast %0 : vector<1x4x4xf32> to vector<1x1x4x4xf32>
    tpu.vector_store %arg3[%c0_1, %c0_2, %c0_3, %c0_4], %3 {strides = array<i32>} : memref<1x5x4x4xf32, #tpu.memory_space<vmem>>, vector<1x1x4x4xf32>,
    %c0_5 = arith.constant 0 : index
    %c5 = arith.constant 5 : index
    %c0_6 = arith.constant 0 : index
    %4 = vector.load %arg2[%c0_5, %c5, %c0_6] : memref<1x18x4xf32, #tpu.memory_space<vmem>>, vector<1x4x4xf32>
    %c0_7 = arith.constant 0 : index
    %c1 = arith.constant 1 : index
    %c0_8 = arith.constant 0 : index
    %c0_9 = arith.constant 0 : index
    %5 = vector.load %arg3[%c0_7, %c1, %c0_8, %c0_9] : memref<1x5x4x4xf32, #tpu.memory_space<vmem>>, vector<1x1x4x4xf32>
    %6 = vector.shape_cast %5 : vector<1x1x4x4xf32> to vector<1x4x4xf32>
    %7 = vector.shape_cast %4 : vector<1x4x4xf32> to vector<1x1x4x4xf32>
    tpu.vector_store %arg3[%c0_7, %c1, %c0_8, %c0_9], %7 {strides = array<i32>} : memref<1x5x4x4xf32, #tpu.memory_space<vmem>>, vector<1x1x4x4xf32>,
    %c0_10 = arith.constant 0 : index
    %c8 = arith.constant 8 : index
    %c0_11 = arith.constant 0 : index
    %8 = vector.load %arg2[%c0_10, %c8, %c0_11] : memref<1x18x4xf32, #tpu.memory_space<vmem>>, vector<1x4x4xf32>
    %c0_12 = arith.constant 0 : index
    %c2_13 = arith.constant 2 : index
    %c0_14 = arith.constant 0 : index
    %c0_15 = arith.constant 0 : index
    %9 = vector.load %arg3[%c0_12, %c2_13, %c0_14, %c0_15] : memref<1x5x4x4xf32, #tpu.memory_space<vmem>>, vector<1x1x4x4xf32>
    %10 = vector.shape_cast %9 : vector<1x1x4x4xf32> to vector<1x4x4xf32>
    %11 = vector.shape_cast %8 : vector<1x4x4xf32> to vector<1x1x4x4xf32>
    tpu.vector_store %arg3[%c0_12, %c2_13, %c0_14, %c0_15], %11 {strides = array<i32>} : memref<1x5x4x4xf32, #tpu.memory_space<vmem>>, vector<1x1x4x4xf32>,
    %c0_16 = arith.constant 0 : index
    %c11 = arith.constant 11 : index
    %c0_17 = arith.constant 0 : index
    %12 = vector.load %arg2[%c0_16, %c11, %c0_17] : memref<1x18x4xf32, #tpu.memory_space<vmem>>, vector<1x4x4xf32>
    %c0_18 = arith.constant 0 : index
    %c3 = arith.constant 3 : index
    %c0_19 = arith.constant 0 : index
    %c0_20 = arith.constant 0 : index
    %13 = vector.load %arg3[%c0_18, %c3, %c0_19, %c0_20] : memref<1x5x4x4xf32, #tpu.memory_space<vmem>>, vector<1x1x4x4xf32>
    %14 = vector.shape_cast %13 : vector<1x1x4x4xf32> to vector<1x4x4xf32>
    %15 = vector.shape_cast %12 : vector<1x4x4xf32> to vector<1x1x4x4xf32>
    tpu.vector_store %arg3[%c0_18, %c3, %c0_19, %c0_20], %15 {strides = array<i32>} : memref<1x5x4x4xf32, #tpu.memory_space<vmem>>, vector<1x1x4x4xf32>,
    %c0_21 = arith.constant 0 : index
    %c14 = arith.constant 14 : index
    %c0_22 = arith.constant 0 : index
    %16 = vector.load %arg2[%c0_21, %c14, %c0_22] : memref<1x18x4xf32, #tpu.memory_space<vmem>>, vector<1x4x4xf32>
    %c0_23 = arith.constant 0 : index
    %c4 = arith.constant 4 : index
    %c0_24 = arith.constant 0 : index
    %c0_25 = arith.constant 0 : index
    %17 = vector.load %arg3[%c0_23, %c4, %c0_24, %c0_25] : memref<1x5x4x4xf32, #tpu.memory_space<vmem>>, vector<1x1x4x4xf32>
    %18 = vector.shape_cast %17 : vector<1x1x4x4xf32> to vector<1x4x4xf32>
    %19 = vector.shape_cast %16 : vector<1x4x4xf32> to vector<1x1x4x4xf32>
    tpu.vector_store %arg3[%c0_23, %c4, %c0_24, %c0_25], %19 {strides = array<i32>} : memref<1x5x4x4xf32, #tpu.memory_space<vmem>>, vector<1x1x4x4xf32>,
    return
  }
  func.func @transform_0(%arg0: i32, %arg1: i32) -> (i32, i32, i32) {
    %c0_i32 = arith.constant 0 : i32
    %c0_i32_0 = arith.constant 0 : i32
    %c0_i32_1 = arith.constant 0 : i32
    return %arg0, %c0_i32, %c0_i32_0 : i32, i32, i32
  }
  func.func @transform_1(%arg0: i32, %arg1: i32) -> (i32, i32, i32, i32) {
    %c0_i32 = arith.constant 0 : i32
    %c0_i32_0 = arith.constant 0 : i32
    %c0_i32_1 = arith.constant 0 : i32
    return %arg0, %arg1, %c0_i32, %c0_i32_0 : i32, i32, i32, i32
  }
}

</mosaic_0001>

<bundles_post_ra>
// kernel: tpu_custom_call.1
= control target key start
LH: loop header
LB: loop body
LE: loop exit
PB: predicated region body
PF: predicated region fallthrough
CT: control target
= control target key end

     0   :  { %s309_s6 = smov 0   ;;  %s311_s7 = smov 0   ;;  %s335_s0 = inlined_call_operand.vmem [shape: f32[2,18,4], index: 0, kind: input, shape index: {}]   ;;  %s336_s1 = inlined_call_operand.vmem [shape: f32[2,5,4,4], index: 1, kind: output, shape index: {}]  }
   0x1   :  { %s313_s8 = smov 0  }
   0x2 LB: > { %s23_s9 = sadd.s32 1, %s293_s7  ;;  %p240_p0 = scmp.ge.s32.totalorder %s297_s8, 1  ;;  %s297_s8 = sphi %s313_s8, %s11_s8   ;;  %s293_s7 = sphi %s311_s7, %s338_s7   ;;  %s289_s6 = sphi %s309_s6, %s337_s6  }
   0x3   : > { %p25_p1 = scmp.ge.s32.totalorder %s23_s9, 2  ;;  %p101_p2 = scmp.lt.s32.totalorder %s297_s8, 3 }
   0x5   : > { %s340_s9 = smov (%p25_p1, %s23_s9), 0  ;;  %p102_p3 = pnand %p240_p0, %p101_p2 }
   0x6   : > { %p125_p4 = scmp.lt.s32.totalorder (!%p102_p3), %s289_s6, 1 }
   0x7   : > { %105 = sbr.rel (%p102_p3) target bundleno = 20 (0x14), region = 24 }
   0xc   : > { %s342_s6 = smov (!%p125_p4, %s289_s6), 1  ;;  %vm141_vm0 = vcmask 27648  }
   0xd   : > { %s249_s10 = smul.u32 24, %s342_s6 }
   0xe   : > { %s250_s11 = smul.u32 20, %s342_s6 }
   0xf   : > { %s129_s14 = scalar_lea.vmem %s335_s0, %s249_s10 }
  0x10   : > { %s138_s17 = scalar_lea.vmem %s336_s1, %s250_s11  ;;  %v140_v0 = vld [vmem:[%s129_s14 + $0x2] sm:$0xf]  ;;  %v146_v2 = vld [vmem:[%s129_s14 + $0x8] sm:$0xf]  ;;  %v152_v4 = vld [vmem:[%s129_s14 + $0xe] sm:$0xf] }
  0x11   : > { %v143_v1 = vld [vmem:[%s129_s14 + $0x5] sm:$0xf]  ;;  %142 = vst.msk [vmem:[%s138_s17] sm:$0xf] %vm141_vm0, %v140_v0  ;;  %244 = vst.msk [vmem:[%s138_s17 + $0x8] sm:$0xf] %vm141_vm0, %v146_v2 }
  0x12   : > { %243 = vst.msk [vmem:[%s138_s17 + $0x4] sm:$0xf] %vm141_vm0, %v143_v1  ;;  %v149_v3 = vld [vmem:[%s129_s14 + $0xb] sm:$0xf]  ;;  %246 = vst.msk [vmem:[%s138_s17 + $0x10] sm:$0xf] %vm141_vm0, %v152_v4 }
  0x13   : > { %245 = vst.msk [vmem:[%s138_s17 + $0xc] sm:$0xf] %vm141_vm0, %v149_v3 }
  0x14 PF: > { %s11_s8 = sadd.s32 1, %s297_s8   ;;  %s337_s6 = smov %s293_s7 }
  0x15   : > { %p8_p5 = scmp.ge.s32.totalorder %s11_s8, 4   ;;  %s338_s7 = smov %s340_s9 }
  0x17   :  { %10 = sbr.rel (!%p8_p5) target bundleno = 2 (0x2), region = 58 }

</bundles_post_ra>
